<compile_context>
chip_gen: v6e
topology: v6e:2x2x1
jax: 0.10.0
libtpu: 0.0.40
codegen_flags: <defaults>
</compile_context>

<pallas_src>
import functools

import jax
import jax.numpy as jnp
from jax.experimental import pallas as pl
from jax.experimental.pallas import tpu as pltpu


# --------------------------------------------------------------------------- #
# Small helpers
# --------------------------------------------------------------------------- #
def _vmem_capacity_bytes():
    """Physical VMEM per core; conservative default if the query is unavailable."""
    try:
        return int(pltpu.get_tpu_info().vmem_capacity_bytes)
    except Exception:
        return 64 << 20  # v7x-sized: safe lower bound on every generation


def _largest_aligned_divisor(n, align, max_size):
    """Largest divisor of n that is a multiple of `align` and <= max_size.

    Returns n itself (full extent) if n is not a multiple of `align`; returns at
    least `align` even if that exceeds max_size (bounded, just over budget).
    """
    if n % align != 0:
        return n
    max_size = max(max_size, align)
    m = n // align
    best = 1
    i = 1
    while i * i <= m:
        if m % i == 0:
            for d in (i, m // i):
                if d * align <= max_size and d > best:
                    best = d
        i += 1
    return best * align


# --------------------------------------------------------------------------- #
# Fused single-pass kernel:  grid = (B,), one resident (C, HW) block per batch.
# mean -> fc1/relu/fc2 -> coefs -> out = max_j (x*a_j + b_j), all on the block.
# --------------------------------------------------------------------------- #
def dyrelu_fused_kernel(x_ref, w1t_ref, b1_ref, w2_ref, b2_ref, lam_ref, init_ref,
                        o_ref, *, k, inv_hw):
    x = x_ref[0]                                                       # (C, HW), caller dtype
    # --- squeeze: per-channel spatial mean (always f32) ---
    theta = jnp.sum(x.astype(jnp.float32), axis=-1, keepdims=True) * inv_hw       # (C, 1)
    # --- tiny FC stack (f32 broadcast-mul + reduce; never the MXU) ---
    h = jnp.sum(w1t_ref[...] * theta, axis=0, keepdims=True) + b1_ref[...]        # (1, Cr)
    h = jnp.maximum(h, 0.0)
    tt = jnp.sum(w2_ref[...] * h, axis=1, keepdims=True) + b2_ref[...]            # (2k, 1)
    coefs = (2.0 * jax.nn.sigmoid(tt) - 1.0) * lam_ref[...] + init_ref[...]       # (2k, 1)

    # --- apply on the same resident block; keep bf16 data in bf16 on the hot path ---
    cdt = jnp.bfloat16 if x.dtype == jnp.bfloat16 else jnp.float32
    coefs = coefs.astype(cdt)
    xf = x.astype(cdt)
    out = xf * coefs[0:1, 0:1] + coefs[k:k + 1, 0:1]
    for j in range(1, k):
        out = jnp.maximum(out, xf * coefs[j:j + 1, 0:1] + coefs[k + j:k + j + 1, 0:1])
    o_ref[0] = out.astype(o_ref.dtype)


# --------------------------------------------------------------------------- #
# Two-pass fallback, pass 1: channel-tiled spatial mean + tiny fc1/relu/fc2.
# grid = (B, C_tiles); C-tile axis is "arbitrary" (shared coefs output + scratch).
# Lanes hold the full HW extent, so there is no HW % 128 restriction and the
# block size is bounded by the channel tile (no full (C, HW) block ever needed).
# --------------------------------------------------------------------------- #
def dyrelu_coefs_kernel(x_ref, w1t_ref, b1_ref, w2_ref, b2_ref, lam_ref, init_ref,
                        coefs_ref, acc_ref, *, inv_hw, c_tile, c_blocks):
    ci = pl.program_id(1)
    sums = jnp.sum(x_ref[0].astype(jnp.float32), axis=-1, keepdims=True)   # (c_tile, 1)
    if c_blocks == 1:
        acc_ref[...] = sums
    else:
        # c_tile is a multiple of 8 here (tile-aligned sublane store).
        acc_ref[pl.ds(pl.multiple_of(ci * c_tile, c_tile), c_tile), :] = sums

    @pl.when(ci == c_blocks - 1)
    def _():
        theta = acc_ref[...] * inv_hw                                           # (C, 1)
        h = jnp.sum(w1t_ref[...] * theta, axis=0, keepdims=True) + b1_ref[...]  # (1, Cr)
        h = jnp.maximum(h, 0.0)
        tt = jnp.sum(w2_ref[...] * h, axis=1, keepdims=True) + b2_ref[...]      # (2k, 1)
        coefs_ref[0] = (2.0 * jax.nn.sigmoid(tt) - 1.0) * lam_ref[...] + init_ref[...]


# --------------------------------------------------------------------------- #
# Two-pass fallback, pass 2: memory-bound elementwise apply.
# coefs live in SMEM as a flat (B*2k,) f32 array (scalar splat, batch-indexed).
# x is either (B, C*HW/128, 128) (lane-dense) or (B, C, HW) (N % 128 != 0 fallback).
# --------------------------------------------------------------------------- #
def dyrelu_apply_kernel(coefs_ref, x_ref, o_ref, *, k):
    b = pl.program_id(0)
    base = b * (2 * k)
    x = x_ref[0]
    cdt = jnp.bfloat16 if x.dtype == jnp.bfloat16 else jnp.float32
    xf = x.astype(cdt)
    out = xf * coefs_ref[base].astype(cdt) + coefs_ref[base + k].astype(cdt)
    for j in range(1, k):
        out = jnp.maximum(out, xf * coefs_ref[base + j].astype(cdt)
                               + coefs_ref[base + k + j].astype(cdt))
    o_ref[0] = out.astype(o_ref.dtype)


# --------------------------------------------------------------------------- #
# Wrapper
# --------------------------------------------------------------------------- #
def dyrelu_a(x_nchw, w1, b1, w2, b2, lambdas, init_v, *, k=2,
             force_two_pass=False, block_budget_bytes=None):
    B, C, H, W = x_nchw.shape
    HW = H * W
    N = C * HW
    Cr = w1.shape[0]
    itemsize = x_nchw.dtype.itemsize

    vmem_cap = _vmem_capacity_bytes()
    vmem_limit = (vmem_cap * 3) // 4                       # 48 MiB on v7x, 96 MiB on v5e/v6e
    # Fused path holds: x block + out block, each double-buffered (= 4 blocks) + tiny params.
    fused_budget = max(1 << 20, (vmem_limit - (4 << 20)) // 4)
    if block_budget_bytes is None:
        block_budget_bytes = 4 << 20                       # measured ~85% roofline at >=512 lanes

    # Tiny f32 parameters (kept off the per-element hot path).
    w1t = jnp.asarray(w1, jnp.float32).T                   # (C, Cr)  = fc1.weight^T
    b1r = jnp.asarray(b1, jnp.float32).reshape(1, Cr)
    w2f = jnp.asarray(w2, jnp.float32)                     # (2k, Cr) = fc2.weight
    b2c = jnp.asarray(b2, jnp.float32).reshape(2 * k, 1)
    lamc = jnp.asarray(lambdas, jnp.float32).reshape(2 * k, 1)
    initc = jnp.asarray(init_v, jnp.float32).reshape(2 * k, 1)

    params = (w1t, b1r, w2f, b2c, lamc, initc)
    bytes_per_batch = N * itemsize

    # ------------------------------ fused path ------------------------------ #
    if (not force_two_pass) and bytes_per_batch <= fused_budget:
        x = x_nchw.reshape(B, C, HW)                       # free reshape, native NCHW order
        out = pl.pallas_call(
            functools.partial(dyrelu_fused_kernel, k=k, inv_hw=float(1.0 / HW)),
            out_shape=jax.ShapeDtypeStruct((B, C, HW), x.dtype),
            grid=(B,),
            in_specs=[
                pl.BlockSpec((1, C, HW), lambda b: (b, 0, 0)),      # x slab (full extent)
                pl.BlockSpec((C, Cr), lambda b: (0, 0)),            # W1^T
                pl.BlockSpec((1, Cr), lambda b: (0, 0)),            # b1
                pl.BlockSpec((2 * k, Cr), lambda b: (0, 0)),        # W2
                pl.BlockSpec((2 * k, 1), lambda b: (0, 0)),         # b2
                pl.BlockSpec((2 * k, 1), lambda b: (0, 0)),         # lambdas
                pl.BlockSpec((2 * k, 1), lambda b: (0, 0)),         # init_v
            ],
            out_specs=pl.BlockSpec((1, C, HW), lambda b: (b, 0, 0)),
            compiler_params=pltpu.CompilerParams(
                dimension_semantics=("parallel",),
                vmem_limit_bytes=vmem_limit),
            cost_estimate=pl.CostEstimate(
                flops=int(B * N * (1 + 3 * k)),
                transcendentals=int(B * 2 * k),
                bytes_accessed=int(2 * B * N * itemsize)),
        )(x, *params)
        return out.reshape(B, C, H, W)

    # ---------------------------- two-pass path ----------------------------- #
    # Pass 1: coefficients (B, 2k).  Tile over C; lanes hold the full HW extent.
    x3 = x_nchw.reshape(B, C, HW)
    ct = _largest_aligned_divisor(C, 8, max(8, block_budget_bytes // max(1, HW * itemsize)))
    c_blocks = C // ct
    # TODO(synk): pathological tiny-C / enormous-HW shapes could still exceed the block
    # budget here (smallest channel tile is 8); would need masked HW tiling in that case.

    coefs3 = pl.pallas_call(
        functools.partial(dyrelu_coefs_kernel, inv_hw=float(1.0 / HW),
                          c_tile=ct, c_blocks=c_blocks),
        out_shape=jax.ShapeDtypeStruct((B, 2 * k, 1), jnp.float32),
        grid=(B, c_blocks),
        in_specs=[
            pl.BlockSpec((1, ct, HW), lambda b, ci: (b, ci, 0)),    # x channel tile
            pl.BlockSpec((C, Cr), lambda b, ci: (0, 0)),            # W1^T
            pl.BlockSpec((1, Cr), lambda b, ci: (0, 0)),            # b1
            pl.BlockSpec((2 * k, Cr), lambda b, ci: (0, 0)),        # W2
            pl.BlockSpec((2 * k, 1), lambda b, ci: (0, 0)),         # b2
            pl.BlockSpec((2 * k, 1), lambda b, ci: (0, 0)),         # lambdas
            pl.BlockSpec((2 * k, 1), lambda b, ci: (0, 0)),         # init_v
        ],
        out_specs=pl.BlockSpec((1, 2 * k, 1), lambda b, ci: (b, 0, 0)),
        scratch_shapes=[pltpu.VMEM((C, 1), jnp.float32)],
        compiler_params=pltpu.CompilerParams(
            dimension_semantics=("parallel", "arbitrary"),
            vmem_limit_bytes=vmem_limit),
        cost_estimate=pl.CostEstimate(
            flops=int(B * N), transcendentals=int(B * 2 * k),
            bytes_accessed=int(B * N * itemsize)),
    )(x3, *params)
    coefs_flat = coefs3.reshape(B * 2 * k)                  # tiny reshape; 1-D for cheap SMEM

    # Pass 2: out = max_j (x*a_j + b_j).  coefs depend only on batch, so flatten (C, HW)
    # into a lane-dense (rows, 128) layout whenever C*HW % 128 == 0 (unmasked vst, tile
    # size decoupled from C and HW).
    if N % 128 == 0:
        rows = N // 128
        rt = _largest_aligned_divisor(rows, 8, max(8, block_budget_bytes // (128 * itemsize)))
        x2 = x_nchw.reshape(B, rows, 128)                   # free reshape (row-major)
        blk = (1, rt, 128)
        grid2 = (B, rows // rt)
        out_shape2 = jax.ShapeDtypeStruct((B, rows, 128), x_nchw.dtype)
    else:
        # Fallback: channel-tiled, full-HW lanes (lane-masked stores but bounded VMEM).
        ct2 = _largest_aligned_divisor(C, 8, max(8, block_budget_bytes // max(1, HW * itemsize)))
        x2 = x_nchw.reshape(B, C, HW)
        blk = (1, ct2, HW)
        grid2 = (B, C // ct2)
        out_shape2 = jax.ShapeDtypeStruct((B, C, HW), x_nchw.dtype)

    out = pl.pallas_call(
        functools.partial(dyrelu_apply_kernel, k=k),
        out_shape=out_shape2,
        grid=grid2,
        in_specs=[
            pl.BlockSpec(memory_space=pltpu.MemorySpace.SMEM),      # coefs, flat 1-D
            pl.BlockSpec(blk, lambda b, t: (b, t, 0)),              # x tile
        ],
        out_specs=pl.BlockSpec(blk, lambda b, t: (b, t, 0)),
        compiler_params=pltpu.CompilerParams(
            dimension_semantics=("parallel", "parallel"),
            vmem_limit_bytes=vmem_limit),
        cost_estimate=pl.CostEstimate(
            flops=int(3 * k * B * N), transcendentals=0,
            bytes_accessed=int(2 * B * N * itemsize)),
    )(coefs_flat, x2)
    return out.reshape(B, C, H, W)


# --------------------------------------------------------------------------- #
# Pure-JAX reference (mirrors the PyTorch forward), NCHW in / NCHW out.
# --------------------------------------------------------------------------- #
def dyrelu_a_reference(x, w1, b1, w2, b2, lambdas, init_v, *, k=2):
    theta = jnp.mean(x, axis=-1)
    theta = jnp.mean(theta, axis=-1)                        # (B, C)
    theta = jnp.maximum(theta @ w1.T + b1, 0.0)
    theta = theta @ w2.T + b2
    theta = 2.0 * jax.nn.sigmoid(theta) - 1.0               # (B, 2k)
    coefs = theta * lambdas + init_v                        # (B, 2k)
    a = coefs[:, None, None, None, :k]                      # (B,1,1,1,k)
    bb = coefs[:, None, None, None, k:]
    out = x[..., None] * a + bb                             # (B,C,H,W,k)
    return jnp.max(out, axis=-1)


if __name__ == "__main__":
    key = jax.random.PRNGKey(0)
    kx, k1, k2, k3, k4 = jax.random.split(key, 5)

    kk = 2
    reduction = 4

    def make_params(C):
        Cr = C // reduction
        w1 = 0.1 * jax.random.normal(k1, (Cr, C), dtype=jnp.float32)         # fc1.weight
        b1 = 0.05 * jax.random.normal(k2, (Cr,), dtype=jnp.float32)          # fc1.bias
        w2 = 0.1 * jax.random.normal(k3, (2 * kk, Cr), dtype=jnp.float32)    # fc2.weight
        b2 = 0.05 * jax.random.normal(k4, (2 * kk,), dtype=jnp.float32)      # fc2.bias
        lambdas = jnp.array([1.0] * kk + [0.5] * kk, dtype=jnp.float32)      # buffer
        init_v = jnp.array([1.0] + [0.0] * (2 * kk - 1), dtype=jnp.float32)  # buffer
        return w1, b1, w2, b2, lambdas, init_v

    # (shape, dtype, force_two_pass, block_budget_bytes) — exercises every code path.
    cases = [
        ((2, 16, 16, 16), jnp.float32, False, None),   # fused single-pass
        ((2, 16, 16, 16), jnp.float32, True, 8192),    # two-pass: C-tiled mean + lane-dense apply
        ((2, 16, 10, 10), jnp.float32, False, None),   # fused, HW % 128 != 0
        ((2, 16, 10, 10), jnp.float32, True, None),    # two-pass, N % 128 != 0 fallback
        ((2, 16, 16, 16), jnp.bfloat16, False, None),  # fused, bf16 hot path
    ]

    for shape, dtype, force, budget in cases:
        B, C, H, W = shape
        x = jax.random.normal(kx, shape, dtype=jnp.float32).astype(dtype)
        w1, b1, w2, b2, lambdas, init_v = make_params(C)

        out = dyrelu_a(x, w1, b1, w2, b2, lambdas, init_v, k=kk,
                       force_two_pass=force, block_budget_bytes=budget)
        out = jax.block_until_ready(out)

        ref = dyrelu_a_reference(x.astype(jnp.float32), w1, b1, w2, b2,
                                 lambdas, init_v, k=kk)
        assert out.shape == shape, (shape, out.shape)
        assert out.dtype == dtype, (dtype, out.dtype)
        tol = 1e-5 if dtype == jnp.float32 else 5e-2
        assert jnp.allclose(out.astype(jnp.float32), ref, atol=tol, rtol=tol), (shape, force)

    print("KERNEL_OK")
</pallas_src>

<mosaic_0001>
module attributes {stable_mosaic.version = 11 : i64} {
  func.func @dyrelu_fused_kernel(%arg0: i32, %arg1: memref<1x16x256xf32, #tpu.memory_space<vmem>>, %arg2: memref<16x4xf32, #tpu.memory_space<vmem>>, %arg3: memref<1x4xf32, #tpu.memory_space<vmem>>, %arg4: memref<4x4xf32, #tpu.memory_space<vmem>>, %arg5: memref<4x1xf32, #tpu.memory_space<vmem>>, %arg6: memref<4x1xf32, #tpu.memory_space<vmem>>, %arg7: memref<4x1xf32, #tpu.memory_space<vmem>>, %arg8: memref<1x16x256xf32, #tpu.memory_space<vmem>>) attributes {dimension_semantics = [#tpu.dimension_semantics<parallel>], iteration_bounds = array<i64: 2>, scalar_prefetch = 0 : i64, scratch_operands = 0 : i64, tpu.core_type = #tpu.core_type<tc>, window_params = [{transform_indices = @transform_0, window_bounds = array<i64: 1, 16, 256>}, {pipeline_mode = #tpu.pipeline_mode<synchronous>, transform_indices = @transform_1, window_bounds = array<i64: 16, 4>}, {pipeline_mode = #tpu.pipeline_mode<synchronous>, transform_indices = @transform_2, window_bounds = array<i64: 1, 4>}, {pipeline_mode = #tpu.pipeline_mode<synchronous>, transform_indices = @transform_3, window_bounds = array<i64: 4, 4>}, {pipeline_mode = #tpu.pipeline_mode<synchronous>, transform_indices = @transform_4, window_bounds = array<i64: 4, 1>}, {pipeline_mode = #tpu.pipeline_mode<synchronous>, transform_indices = @transform_5, window_bounds = array<i64: 4, 1>}, {pipeline_mode = #tpu.pipeline_mode<synchronous>, transform_indices = @transform_6, window_bounds = array<i64: 4, 1>}, {transform_indices = @transform_7, window_bounds = array<i64: 1, 16, 256>}]} {
    %c0 = arith.constant 0 : index
    %c0_0 = arith.constant 0 : index
    %c0_1 = arith.constant 0 : index
    %0 = vector.load %arg1[%c0, %c0_0, %c0_1] : memref<1x16x256xf32, #tpu.memory_space<vmem>>, vector<1x16x256xf32>
    %1 = vector.shape_cast %0 : vector<1x16x256xf32> to vector<16x256xf32>
    %cst = arith.constant dense<0.000000e+00> : vector<16xf32>
    %2 = vector.multi_reduction <add>, %1, %cst [1] : vector<16x256xf32> to vector<16xf32>
    %3 = vector.shape_cast %2 : vector<16xf32> to vector<16x1xf32>
    %cst_2 = arith.constant 3.906250e-03 : f32
    %4 = vector.broadcast %cst_2 : f32 to vector<16x1xf32>
    %5 = arith.mulf %3, %4 : vector<16x1xf32>
    %c0_3 = arith.constant 0 : index
    %c0_4 = arith.constant 0 : index
    %6 = vector.load %arg2[%c0_3, %c0_4] : memref<16x4xf32, #tpu.memory_space<vmem>>, vector<16x4xf32>
    %7 = vector.broadcast %5 : vector<16x1xf32> to vector<16x4xf32>
    %8 = arith.mulf %6, %7 : vector<16x4xf32>
    %cst_5 = arith.constant dense<0.000000e+00> : vector<4xf32>
    %9 = vector.multi_reduction <add>, %8, %cst_5 [0] : vector<16x4xf32> to vector<4xf32>
    %10 = vector.shape_cast %9 : vector<4xf32> to vector<1x4xf32>
    %c0_6 = arith.constant 0 : index
    %c0_7 = arith.constant 0 : index
    %11 = vector.load %arg3[%c0_6, %c0_7] : memref<1x4xf32, #tpu.memory_space<vmem>>, vector<1x4xf32>
    %12 = arith.addf %10, %11 : vector<1x4xf32>
    %cst_8 = arith.constant 0.000000e+00 : f32
    %13 = vector.broadcast %cst_8 : f32 to vector<1x4xf32>
    %14 = arith.maximumf %12, %13 : vector<1x4xf32>
    %c0_9 = arith.constant 0 : index
    %c0_10 = arith.constant 0 : index
    %15 = vector.load %arg4[%c0_9, %c0_10] : memref<4x4xf32, #tpu.memory_space<vmem>>, vector<4x4xf32>
    %16 = vector.broadcast %14 : vector<1x4xf32> to vector<4x4xf32>
    %17 = arith.mulf %15, %16 : vector<4x4xf32>
    %cst_11 = arith.constant dense<0.000000e+00> : vector<4xf32>
    %18 = vector.multi_reduction <add>, %17, %cst_11 [1] : vector<4x4xf32> to vector<4xf32>
    %19 = vector.shape_cast %18 : vector<4xf32> to vector<4x1xf32>
    %c0_12 = arith.constant 0 : index
    %c0_13 = arith.constant 0 : index
    %20 = vector.load %arg5[%c0_12, %c0_13] : memref<4x1xf32, #tpu.memory_space<vmem>>, vector<4x1xf32>
    %21 = arith.addf %19, %20 : vector<4x1xf32>
    %22 = arith.negf %21 : vector<4x1xf32>
    %23 = math.exp %22 : vector<4x1xf32>
    %cst_14 = arith.constant 1.000000e+00 : f32
    %24 = vector.broadcast %cst_14 : f32 to vector<4x1xf32>
    %25 = arith.addf %24, %23 : vector<4x1xf32>
    %26 = arith.divf %24, %25 : vector<4x1xf32>
    %cst_15 = arith.constant 2.000000e+00 : f32
    %27 = vector.broadcast %cst_15 : f32 to vector<4x1xf32>
    %28 = arith.mulf %27, %26 : vector<4x1xf32>
    %cst_16 = arith.constant 1.000000e+00 : f32
    %29 = vector.broadcast %cst_16 : f32 to vector<4x1xf32>
    %30 = arith.subf %28, %29 : vector<4x1xf32>
    %c0_17 = arith.constant 0 : index
    %c0_18 = arith.constant 0 : index
    %31 = vector.load %arg6[%c0_17, %c0_18] : memref<4x1xf32, #tpu.memory_space<vmem>>, vector<4x1xf32>
    %32 = arith.mulf %30, %31 : vector<4x1xf32>
    %c0_19 = arith.constant 0 : index
    %c0_20 = arith.constant 0 : index
    %33 = vector.load %arg7[%c0_19, %c0_20] : memref<4x1xf32, #tpu.memory_space<vmem>>, vector<4x1xf32>
    %34 = arith.addf %32, %33 : vector<4x1xf32>
    %35 = vector.extract_strided_slice %34 {offsets = [0, 0], sizes = [1, 1], strides = [1, 1]} : vector<4x1xf32> to vector<1x1xf32>
    %36 = vector.broadcast %35 : vector<1x1xf32> to vector<16x256xf32>
    %37 = arith.mulf %1, %36 : vector<16x256xf32>
    %38 = vector.extract_strided_slice %34 {offsets = [2, 0], sizes = [1, 1], strides = [1, 1]} : vector<4x1xf32> to vector<1x1xf32>
    %39 = vector.broadcast %38 : vector<1x1xf32> to vector<16x256xf32>
    %40 = arith.addf %37, %39 : vector<16x256xf32>
    %41 = vector.extract_strided_slice %34 {offsets = [1, 0], sizes = [1, 1], strides = [1, 1]} : vector<4x1xf32> to vector<1x1xf32>
    %42 = vector.broadcast %41 : vector<1x1xf32> to vector<16x256xf32>
    %43 = arith.mulf %1, %42 : vector<16x256xf32>
    %44 = vector.extract_strided_slice %34 {offsets = [3, 0], sizes = [1, 1], strides = [1, 1]} : vector<4x1xf32> to vector<1x1xf32>
    %45 = vector.broadcast %44 : vector<1x1xf32> to vector<16x256xf32>
    %46 = arith.addf %43, %45 : vector<16x256xf32>
    %47 = arith.maximumf %40, %46 : vector<16x256xf32>
    %c0_21 = arith.constant 0 : index
    %c0_22 = arith.constant 0 : index
    %c0_23 = arith.constant 0 : index
    %48 = vector.load %arg8[%c0_21, %c0_22, %c0_23] : memref<1x16x256xf32, #tpu.memory_space<vmem>>, vector<1x16x256xf32>
    %49 = vector.shape_cast %48 : vector<1x16x256xf32> to vector<16x256xf32>
    %50 = vector.shape_cast %47 : vector<16x256xf32> to vector<1x16x256xf32>
    tpu.vector_store %arg8[%c0_21, %c0_22, %c0_23], %50 {strides = array<i32>} : memref<1x16x256xf32, #tpu.memory_space<vmem>>, vector<1x16x256xf32>,
    return
  }
  func.func @transform_0(%arg0: i32) -> (i32, i32, i32) {
    %c0_i32 = arith.constant 0 : i32
    %c0_i32_0 = arith.constant 0 : i32
    %c0_i32_1 = arith.constant 0 : i32
    return %arg0, %c0_i32, %c0_i32_0 : i32, i32, i32
  }
  func.func @transform_1(%arg0: i32) -> (i32, i32) {
    %c0_i32 = arith.constant 0 : i32
    %c0_i32_0 = arith.constant 0 : i32
    %c0_i32_1 = arith.constant 0 : i32
    return %c0_i32, %c0_i32_0 : i32, i32
  }
  func.func @transform_2(%arg0: i32) -> (i32, i32) {
    %c0_i32 = arith.constant 0 : i32
    %c0_i32_0 = arith.constant 0 : i32
    %c0_i32_1 = arith.constant 0 : i32
    return %c0_i32, %c0_i32_0 : i32, i32
  }
  func.func @transform_3(%arg0: i32) -> (i32, i32) {
    %c0_i32 = arith.constant 0 : i32
    %c0_i32_0 = arith.constant 0 : i32
    %c0_i32_1 = arith.constant 0 : i32
    return %c0_i32, %c0_i32_0 : i32, i32
  }
  func.func @transform_4(%arg0: i32) -> (i32, i32) {
    %c0_i32 = arith.constant 0 : i32
    %c0_i32_0 = arith.constant 0 : i32
    %c0_i32_1 = arith.constant 0 : i32
    return %c0_i32, %c0_i32_0 : i32, i32
  }
  func.func @transform_5(%arg0: i32) -> (i32, i32) {
    %c0_i32 = arith.constant 0 : i32
    %c0_i32_0 = arith.constant 0 : i32
    %c0_i32_1 = arith.constant 0 : i32
    return %c0_i32, %c0_i32_0 : i32, i32
  }
  func.func @transform_6(%arg0: i32) -> (i32, i32) {
    %c0_i32 = arith.constant 0 : i32
    %c0_i32_0 = arith.constant 0 : i32
    %c0_i32_1 = arith.constant 0 : i32
    return %c0_i32, %c0_i32_0 : i32, i32
  }
  func.func @transform_7(%arg0: i32) -> (i32, i32, i32) {
    %c0_i32 = arith.constant 0 : i32
    %c0_i32_0 = arith.constant 0 : i32
    %c0_i32_1 = arith.constant 0 : i32
    return %arg0, %c0_i32, %c0_i32_0 : i32, i32, i32
  }
}

</mosaic_0001>

<bundles_post_ra>
// kernel: tpu_custom_call.1
= control target key start
LH: loop header
LB: loop body
LE: loop exit
PB: predicated region body
PF: predicated region fallthrough
CT: control target
= control target key end

     0   :  { %12 = vsyncpa [#allocation3], 0  ;;  %s896_s0 = inlined_call_operand.hbm [shape: f32[2,16,256], index: 0, kind: input, shape index: {}]   ;;  %s897_s1 = inlined_call_operand.vmem [shape: f32[16,4], index: 1, kind: input, shape index: {}]   ;;  %s898_s2 = inlined_call_operand.vmem [shape: f32[1,4], index: 2, kind: input, shape index: {}]   ;;  %s899_s3 = inlined_call_operand.vmem [shape: f32[4,4], index: 3, kind: input, shape index: {}]   ;;  %s900_s4 = inlined_call_operand.vmem [shape: f32[4,1], index: 4, kind: input, shape index: {}]   ;;  %s901_s5 = inlined_call_operand.vmem [shape: f32[4,1], index: 5, kind: input, shape index: {}]   ;;  %s902_s6 = inlined_call_operand.vmem [shape: f32[4,1], index: 6, kind: input, shape index: {}]   ;;  %s903_s7 = inlined_call_operand.hbm [shape: f32[2,16,256], index: 7, kind: output, shape index: {}]  }
   0x1   :  { %14 = vsyncpa [#allocation3 + $0x1], 0 }
   0x2   :  { %15 = vsyncpa [#allocation4], 0 }
   0x3   :  { %17 = vsyncpa [#allocation4 + $0x1], 0  ;;  %s697_s24 = smov 0   ;;  %s699_s25 = smov 0  }
   0x4   :  { %s701_s26 = smov 0   ;;  %s703_s27 = smov 0  }
   0x5 LB: > { %s718_s28 = sadd.s32 4294967295, %s649_s27   ;;  %s477_s29 = sadd.s32 4294967294, %s649_s27   ;;  %s649_s27 = sphi %s703_s27, %s918_s27   ;;  %s645_s26 = sphi %s701_s26, %s917_s26   ;;  %s641_s25 = sphi %s699_s25, %s916_s25   ;;  %s637_s24 = sphi %s697_s24, %s915_s24  }
   0x6   : > { %s722_s30 = sadd.s32 1, %s649_s27   ;;  %s30_s8 = sadd.s32 1, %s645_s26 }
   0x7   : > { %s27_s9 = ssub.s32 %s649_s27, %s722_s30  ;;  %p37_p0 = scmp.ne.s32.totalorder %s645_s26, %s641_s25 }
   0x8   : > { %p28_p1 = scmp.eq.s32.totalorder %s27_s9, 0  ;;  %p38_p2 = scmp.eq.s32.totalorder %s649_s27, 0 }
   0x9   : > { %p43_p3 = scmp.ne.s32.totalorder %s641_s25, %s637_s24  ;;  %p44_p4 = scmp.eq.s32.totalorder %s718_s28, 0 }
   0xa   : > { %s734_s10 = scalar_select %p28_p1, %s645_s26, %s30_s8  }
   0xb   : > { %p736_p5 = por %p38_p2, %p37_p0  ;;  %p740_p6 = por %p44_p4, %p43_p3 }
   0xc   : > { %p193_p7 = scmp.eq.s32.totalorder %s718_s28, 1  ;;  %p199_p8 = scmp.eq.s32.totalorder %s477_s29, 1 }
   0xd   : > { %s907_s12 = scalar_select %p740_p6, 1, 0 }
   0xe   : > { %p515_p10 = scmp.lt.s32.totalorder %s649_s27, 2  ;;  %p747_p11 = por %p193_p7, %p37_p0 }
   0xf   : > { %p751_p12 = por %p199_p8, %p43_p3  ;;  %s237_s15 = sand.u32 1, %s645_s26  }
  0x10   : > { %s908_s13 = scalar_select %p747_p11, 1, 0 }
  0x11   : > { %s909_s14 = scalar_select %p751_p12, 1, 0 }
  0x12   : > { %s493_s16 = sshll.u32 %s649_s27, 9  ;;  %s480_s17 = sshll.u32 %s237_s15, 5 }
  0x13   : > { %s760_s20 = scalar_lea.hbm %s896_s0, %s493_s16  ;;  %s241_s21 = scalar_lea.vmem [#allocation2], %s480_s17 }
  0x14   : > { %s248_s22 = sshll.u32 %s241_s21, 4  ;;  %p764_p13 = pnand %p515_p10, %p736_p5  ;;  %s768_s22 = int_to_ptr.vmem [resolvable:$true] %s248_s22 }
  0x15   : > { %s770_s29 = scalar_lea.sflag [#allocation3], %s237_s15  ;;  %s557_s8 = scalar_lea.hbm %s760_s20, 512 }
  0x16   : > { %p558_p0 = scmp.ne.s32.totalorder %s760_s20, %s557_s8  ;;  %p559_p1 = pneg %p764_p13 }
  0x17   : > { %s562_s17 = scalar_lea.hbm %s896_s0, 1024  ;;  %p563_p4 = scmp.lt.s32.totalorder %s760_s20, %s896_s0 }
  0x18   : > { %p560_p2 = pnand %p559_p1, %p558_p0  ;;  %p564_p5 = scmp.lt.s32.totalorder %s562_s17, %s557_s8 }
  0x1a   : > { %p561_p3 = pneg %p560_p2  ;;  %p565_p7 = por %p564_p5, %p563_p4 }
  0x1c   : > { %p566_p8 = pnand %p565_p7, %p561_p3 }
  0x1e   : > { %569 = shalt.err (!%p566_p8)
}
  0x1f   : > { %s570_s15 = scalar_lea.vmem %s768_s22, 512  ;;  %s651_s19 = smov [#allocation2]  }
  0x20   : > { %p571_p10 = scmp.ne.s32.totalorder %s768_s22, %s570_s15  ;;  %s575_s21 = sshll.u32 %s651_s19, 4  ;;  %s576_s21 = int_to_ptr.vmem [resolvable:$false] %s575_s21 }
  0x21   : > { %s577_s9 = scalar_lea.vmem %s576_s21, 1024  ;;  %p578_p2 = scmp.lt.s32.totalorder %s768_s22, %s576_s21 }
  0x22   : > { %p573_p9 = pnand %p571_p10, %p559_p1  ;;  %p579_p12 = scmp.lt.s32.totalorder %s577_s9, %s570_s15 }
  0x24   : > { %p574_p0 = pneg %p573_p9  ;;  %p580_p11 = por %p579_p12, %p578_p2 }
  0x26   : > { %p581_p6 = pnand %p580_p11, %p574_p0 }
  0x28   : > { %584 = shalt.err (!%p581_p6)
}
  0x29   : > { %s652_s8 = smov 256   ;;  %s653_s16 = smov 16  }
  0x2a   : > { %510 = dma.hbm_to_vmem [thread:$0]  (!%p764_p13), %s760_s20, 512, %s768_s22, %s770_s29, %s652_s8, %s652_s8, %s653_s16  }
  0x2b   : > { %p483_p9 = scmp.ge.s32.totalorder %s649_s27, 1  ;;  %p256_p1 = scmp.lt.s32.totalorder %s649_s27, 3 }
  0x2d   : > { %p257_p3 = pnand %p483_p9, %p256_p1 }
  0x2e   : > { %s794_s17 = sand.u32 (!%p257_p3), 1, %s641_s25   ;;  %p911_p6 = scmp.ne.s32.totalorder (!%p257_p3), %s907_s12, 0 }
  0x2f   : > { %260 = sbr.rel (%p257_p3) target bundleno = 481 (0x1e1), region = 48  ;;  %s484_s11 = sshll.u32 (!%p257_p3), %s794_s17, 5 }
  0x30   : > { %s263_s18 = scalar_lea.sflag (!%p257_p3), [#allocation3], %s794_s17  ;;  %s266_s15 = scalar_lea.vmem (!%p257_p3), [#allocation2], %s484_s11 }
  0x34   : > { %628 = dma.done.wait (%p911_p6), %s263_s18, 512  }
  0x35   : > { %630 = vsyncadd (%p911_p6), %s263_s18, 4294966784  ;;  %v804_v0 = vld [vmem:[%s266_s15] sm:$0xff]  ;;  %v806_v1 = vld [vmem:[%s266_s15 + $0x8] sm:$0xff]  ;;  %vm313_vm0 = vcmask 31744   ;;  %v327_v20 = vlaneseq  ;;  %vm332_vm1 = vcmask 27648   ;;  %s296_s21 = scalar_lea.vmem [#allocation5], %s484_s11 }
  0x36   : > { %v808_v2 = vld [vmem:[%s266_s15 + $0x10] sm:$0xff]  ;;  %v301_v3 = vadd.f32 %v806_v1, %v804_v0  ;;  %v812_v4 = vld [vmem:[%s266_s15 + $0x18] sm:$0xff]  ;;  %v309_v8 = vld [vmem:[%s897_s1] sm:$0xff]  ;;  %s404_s9 = sshll.u32 %s296_s21, 4  ;;  %s494_s8 = sshll.u32 %s718_s28, 9  ;;  %s848_s9 = int_to_ptr.vmem [resolvable:$true] %s404_s9 }
  0x37   : > { %v304_v5 = vadd.f32 %v812_v4, %v808_v2  ;;  %v310_v9 = vld [vmem:[%s897_s1 + $0x8] sm:$0xff]  ;;  %v328_v23 = vshrl.u32 %v327_v20, 7  ;;  %v323_v24 = vld [vmem:[%s898_s2] sm:$0x1]  ;;  %s853_s18 = scalar_lea.hbm %s903_s7, %s494_s8  ;;  %s391_s28 = scalar_lea.sflag [#allocation4], %s794_s17 }
  0x38   : > { %302 = vadd.xlane.f32.xlu0 %v301_v3  ;;  %v326_v29 = vld [vmem:[%s899_s3] sm:$0xf]  ;;  %s585_s15 = scalar_lea.vmem %s848_s9, 512  ;;  %p912_p12 = scmp.ne.s32.totalorder %s908_s13, 0 }
  0x39   : > { %v329_v27 = vsub.s32 0, %v328_v23  ;;  %v336_v33 = vld [vmem:[%s900_s4] sm:$0xf]  ;;  %p586_p11 = scmp.ne.s32.totalorder %s848_s9, %s585_s15  ;;  %s654_s12 = smov [#allocation5]  }
  0x3a   : > { %v346_v41 = vld [vmem:[%s901_s5] sm:$0xf]  ;;  %s589_s20 = sshll.u32 %s654_s12, 4  ;;  %s590_s20 = int_to_ptr.vmem [resolvable:$false] %s589_s20 }
  0x3b   : > { %v348_v43 = vld [vmem:[%s902_s6] sm:$0xf]  ;;  %p587_p13 = pnand %p586_p11, %p912_p12  ;;  %p592_p5 = scmp.lt.s32.totalorder %s848_s9, %s590_s20 }
  0x3c   : > { %305 = vadd.xlane.f32.xlu0 %v304_v5 }
  0x3d   : > { %p588_p4 = pneg %p587_p13 }
  0xc1   : > { %v303_v6 = vpop.xlane.xlu0 %302 }
  0xc2   : > { %v307_v7 = vmul.f32 0.00390625, %v303_v6 }
  0xc4   : > { %v311_v11 = vmul.f32 %v309_v8, %v307_v7 }
  0xc5   : > { %v306_v10 = vpop.xlane.xlu0 %305 }
  0xc6   : > { %v308_v12 = vmul.f32 0.00390625, %v306_v10  ;;  %v314_v14 = vsel %vm313_vm0, %v311_v11, 0.0 }
  0xc8   : > { %v312_v13 = vmul.f32 %v310_v9, %v308_v12 }
  0xca   : > { %v315_v15 = vsel %vm313_vm0, %v312_v13, 0.0 }
  0xcb   : > { %v316_v16 = vadd.f32 %v315_v15, %v314_v14 }
  0xcd   : > { %v317_v17 = vrot.slane %v316_v16, 4 }
  0xcf   : > { %v318_v18 = vadd.f32 %v317_v17, %v316_v16 }
  0xd1   : > { %v319_v19 = vrot.slane %v318_v18, 2 }
  0xd3   : > { %v320_v21 = vadd.f32 %v319_v19, %v318_v18 }
  0xd5   : > { %v321_v22 = vrot.slane %v320_v21, 1 }
  0xd7   : > { %v322_v25 = vadd.f32 %v321_v22, %v320_v21 }
  0xd9   : > { %v324_v26 = vadd.f32 %v323_v24, %v322_v25 }
  0xdb   : > { %v325_v28 = vmax.f32 %v324_v26, 0.0 }
  0xdd   : > { %v330_v30 = vrot.slane %v325_v28, %v329_v27 }
  0xdf   : > { %v331_v31 = vmul.f32 %v330_v30, %v326_v29 }
  0xe1   : > { %v333_v32 = vsel %vm332_vm1, %v331_v31, 0.0 }
  0xe2   : > { %334 = vadd.xlane.f32.xlu1 %v333_v32 }
 0x16b   : > { %v335_v34 = vpop.xlane.xlu1 %334 }
 0x16c   : > { %v337_v35 = vadd.f32 %v336_v33, %v335_v34 }
 0x16e   : > { %v486_v36 = vmul.f32 -1.442695, %v337_v35 }
 0x170   : > { %553 = vpow2.f32 %v486_v36 }
 0x17d   : > { %v554_v37 = vpop.eup %553 }
 0x17e   : > { %v341_v38 = vadd.f32 1.0, %v554_v37 }
 0x180   : > { %555 = vrcp.f32 %v341_v38 }
 0x18d   : > { %v556_v39 = vpop.eup %555 }
 0x18e   : > { %v344_v40 = vmul.f32 2.0, %v556_v39 }
 0x190   : > { %v487_v42 = vadd.f32 -1.0, %v344_v40 }
 0x192   : > { %v347_v44 = vmul.f32 %v487_v42, %v346_v41 }
 0x194   : > { %v349_v45 = vadd.f32 %v348_v43, %v347_v44 }
 0x196   : > { %495 = vpush %v349_v45  ;;  %v358_v46 = vrot.slane %v349_v45, 2  ;;  %v366_v47 = vrot.slane %v349_v45, 1  ;;  %v374_v48 = vrot.slane %v349_v45, 3 }
 0x198   : > { %497 = vpush %v358_v46 }
 0x199   : > { %499 = vpush %v366_v47 }
 0x19a   : > { %501 = vpush %v374_v48 }
 0x1c7   : > { %s496_s22 = spop %495 }
 0x1c8   : > { %v352_v49 = vstv %s496_s22  ;;  %s591_s22 = scalar_lea.vmem %s590_s20, 1024 }
 0x1c9   : > { %v354_v50 = vmul.f32 %v352_v49, %v804_v0  ;;  %s498_s23 = spop %497  ;;  %v355_v51 = vmul.f32 %v352_v49, %v806_v1  ;;  %v356_v52 = vmul.f32 %v352_v49, %v808_v2  ;;  %v357_v53 = vmul.f32 %v352_v49, %v812_v4  ;;  %p593_p7 = scmp.lt.s32.totalorder %s591_s22, %s585_s15 }
 0x1ca   : > { %v360_v54 = vstv %s498_s23  ;;  %s500_s29 = spop %499 }
 0x1cb   : > { %s502_s19 = spop %501  ;;  %v362_v55 = vadd.f32 %v360_v54, %v354_v50  ;;  %v368_v56 = vstv %s500_s29  ;;  %v363_v61 = vadd.f32 %v360_v54, %v355_v51  ;;  %v364_v62 = vadd.f32 %v360_v54, %v356_v52  ;;  %p594_p8 = por %p593_p7, %p592_p5 }
 0x1cc   : > { %v370_v57 = vmul.f32 %v368_v56, %v804_v0  ;;  %v371_v58 = vmul.f32 %v368_v56, %v806_v1  ;;  %v372_v59 = vmul.f32 %v368_v56, %v808_v2  ;;  %v373_v60 = vmul.f32 %v368_v56, %v812_v4 }
 0x1cd   : > { %v365_v63 = vadd.f32 %v360_v54, %v357_v53  ;;  %v376_v3 = vstv %s502_s19  ;;  %p595_p10 = pnand %p594_p8, %p588_p4 }
 0x1ce   : > { %v378_v5 = vadd.f32 %v376_v3, %v370_v57  ;;  %v379_v6 = vadd.f32 %v376_v3, %v371_v58  ;;  %v380_v7 = vadd.f32 %v376_v3, %v372_v59  ;;  %v381_v8 = vadd.f32 %v376_v3, %v373_v60 }
 0x1d0   : > { %v382_v0 = vmax.f32 %v362_v55, %v378_v5  ;;  %v383_v1 = vmax.f32 %v363_v61, %v379_v6  ;;  %v384_v2 = vmax.f32 %v364_v62, %v380_v7  ;;  %v385_v4 = vmax.f32 %v365_v63, %v381_v8 }
 0x1d2   : > { %386 = vst [vmem:[%s296_s21] sm:$0xff] %v382_v0  ;;  %387 = vst [vmem:[%s296_s21 + $0x8] sm:$0xff] %v383_v1 }
 0x1d3   : > { %388 = vst [vmem:[%s296_s21 + $0x10] sm:$0xff] %v384_v2  ;;  %389 = vst [vmem:[%s296_s21 + $0x18] sm:$0xff] %v385_v4 }
 0x1d4   : > { %598 = shalt.err (!%p595_p10)
}
 0x1d5   : > { %s599_s23 = scalar_lea.hbm %s853_s18, 512  ;;  %s603_s21 = scalar_lea.hbm %s903_s7, 1024 }
 0x1d6   : > { %p600_p0 = scmp.ne.s32.totalorder %s853_s18, %s599_s23  ;;  %p604_p1 = scmp.lt.s32.totalorder %s853_s18, %s903_s7 }
 0x1d7   : > { %p605_p3 = scmp.lt.s32.totalorder %s603_s21, %s599_s23 }
 0x1d8   : > { %p601_p2 = pnand %p600_p0, %p912_p12 }
 0x1d9   : > { %p606_p6 = por %p605_p3, %p604_p1 }
 0x1da   : > { %p602_p9 = pneg %p601_p2 }
 0x1dc   : > { %p607_p11 = pnand %p606_p6, %p602_p9 }
 0x1de   : > { %610 = shalt.err (!%p607_p11)
}
 0x1df   : > { %s655_s16 = smov 256   ;;  %s656_s15 = smov 16  }
 0x1e0   : > { %505 = dma.vmem_to_hbm [thread:$0]  (%p912_p12), %s848_s9, 512, %s853_s18, %s391_s28, %s655_s16, %s655_s16, %s656_s15  }
 0x1e1 PF: > { %s419_s12 = sand.u32 1, %s637_s24   ;;  %p913_p13 = scmp.ne.s32.totalorder %s909_s14, 0 }
 0x1e2   : > { %p914_p4 = scmp.ge.s32.totalorder %s649_s27, 2  ;;  %s420_s20 = scalar_lea.sflag [#allocation4], %s419_s12 }
 0x1e4   : > { %p512_p5 = pnand %p914_p4, %p913_p13 }
 0x1e6   : > { %p513_p7 = pneg %p512_p5 }
 0x1e8   : > { %632 = dma.done.wait (%p513_p7), %s420_s20, 512  }
 0x1e9   : > { %634 = vsyncadd (%p513_p7), %s420_s20, 4294966784  ;;  %p20_p8 = scmp.ge.s32.totalorder %s722_s30, 4   ;;  %s915_s24 = smov %s641_s25 }
 0x1ea   : > { %s916_s25 = smov %s645_s26  ;;  %s917_s26 = smov %s734_s10 }
 0x1eb   : > { %s918_s27 = smov %s722_s30  ;;  %22 = sbr.rel (!%p20_p8) target bundleno = 5 (0x5), region = 93 }
 0x1f0   :  { %425 = vsyncpa [#allocation3], 1 }
 0x1f1   :  { %427 = vsyncpa [#allocation3 + $0x1], 1 }
 0x1f2   :  { %428 = vsyncpa [#allocation4], 1 }
 0x1f3   :  { %430 = vsyncpa [#allocation4 + $0x1], 1 }

</bundles_post_ra>
